<compile_context>
chip_gen: v6e
topology: v6e:2x2x1
jax: 0.10.0
libtpu: 0.0.40
codegen_flags: <defaults>
</compile_context>

<pallas_src>
import jax
import jax.numpy as jnp
from jax.experimental import pallas as pl
from jax.experimental.pallas import tpu as pltpu


def _round_up(v, m):
    return ((v + m - 1) // m) * m


def _pick_k_tile(k_padded):
    if k_padded % 512 == 0:
        return 512
    if k_padded % 256 == 0:
        return 256
    return 128


# ----------------------------------------------------------------------------
# Kernel 1: plain tiled matmul with optional bias  (x @ Wt + b)
# ----------------------------------------------------------------------------
def _linear_kernel(x_ref, w_ref, b_ref, o_ref, acc_ref):
    k = pl.program_id(1)

    @pl.when(k == 0)
    def _():
        acc_ref[...] = jnp.zeros_like(acc_ref)

    acc_ref[...] += jnp.dot(x_ref[...], w_ref[...],
                            preferred_element_type=jnp.float32)

    @pl.when(k == pl.num_programs(1) - 1)
    def _():
        o_ref[...] = (acc_ref[...] + b_ref[...]).astype(o_ref.dtype)


def _linear(x_p, w_p, b_p, tm, tk):
    n_p, k_p = x_p.shape
    m_p = w_p.shape[1]
    grid = (n_p // tm, k_p // tk)
    return pl.pallas_call(
        _linear_kernel,
        out_shape=jax.ShapeDtypeStruct((n_p, m_p), jnp.float32),
        grid_spec=pltpu.PrefetchScalarGridSpec(
            num_scalar_prefetch=0,
            grid=grid,
            in_specs=[
                pl.BlockSpec((tm, tk), lambda i, k: (i, k)),
                pl.BlockSpec((tk, m_p), lambda i, k: (k, 0)),
                pl.BlockSpec((1, m_p), lambda i, k: (0, 0)),
            ],
            out_specs=pl.BlockSpec((tm, m_p), lambda i, k: (i, 0)),
            scratch_shapes=[pltpu.VMEM((tm, m_p), jnp.float32)],
        ),
        compiler_params=pltpu.CompilerParams(
            dimension_semantics=("parallel", "arbitrary")),
    )(x_p, w_p, b_p)


# ----------------------------------------------------------------------------
# Kernel 2: fused mean-aggregation  out = (A @ h) / deg + b
#           (row-degree accumulated in the same pass over A; divide + bias in epilogue)
# ----------------------------------------------------------------------------
def _aggregate_kernel(a_ref, h_ref, b_ref, o_ref, acc_ref, deg_ref):
    k = pl.program_id(1)

    @pl.when(k == 0)
    def _():
        acc_ref[...] = jnp.zeros_like(acc_ref)
        deg_ref[...] = jnp.zeros_like(deg_ref)

    a = a_ref[...].astype(jnp.float32)       # bf16 0/1 counts -> exact in f32
    acc_ref[...] += jnp.dot(a, h_ref[...], preferred_element_type=jnp.float32)
    deg_ref[...] += jnp.sum(a, axis=-1, keepdims=True)   # fused row-degree

    @pl.when(k == pl.num_programs(1) - 1)
    def _():
        deg = deg_ref[...]
        inv = pl.reciprocal(deg, approx=True)            # EUP slot
        res = acc_ref[...] * inv + b_ref[...]
        o_ref[...] = jnp.where(deg > 0.0, res, 0.0).astype(o_ref.dtype)


def _aggregate(a_p, h_p, b_p, tm, tk):
    n_p = a_p.shape[0]
    m_p = h_p.shape[1]
    grid = (n_p // tm, n_p // tk)
    return pl.pallas_call(
        _aggregate_kernel,
        out_shape=jax.ShapeDtypeStruct((n_p, m_p), jnp.float32),
        grid_spec=pltpu.PrefetchScalarGridSpec(
            num_scalar_prefetch=0,
            grid=grid,
            in_specs=[
                pl.BlockSpec((tm, tk), lambda i, k: (i, k)),   # A tile (bf16)
                pl.BlockSpec((tk, m_p), lambda i, k: (k, 0)),  # feature rows
                pl.BlockSpec((1, m_p), lambda i, k: (0, 0)),   # bias (resident)
            ],
            out_specs=pl.BlockSpec((tm, m_p), lambda i, k: (i, 0)),
            scratch_shapes=[
                pltpu.VMEM((tm, m_p), jnp.float32),   # f32 accumulator
                pltpu.VMEM((tm, 1), jnp.float32),     # fused row degree (never hits HBM)
            ],
        ),
        compiler_params=pltpu.CompilerParams(
            dimension_semantics=("parallel", "arbitrary")),
    )(a_p, h_p, b_p)


# ----------------------------------------------------------------------------
# Wrapper: GraphSAGELayer.forward(x, edge_index)
# ----------------------------------------------------------------------------
def _dense_adjacency(edge_index, num_nodes):
    # torch.sparse_coo_tensor(edge_index, ones).to_dense(): duplicates sum.
    a = jnp.zeros((num_nodes, num_nodes), jnp.float32)
    a = a.at[edge_index[0], edge_index[1]].add(1.0)
    return a.astype(jnp.bfloat16)   # small-integer counts: lossless in bf16


def graphsage_layer_forward(x, edge_index, weight, bias):
    """out = (A @ (x @ W.T + b)) / deg   (0 for isolated nodes).

    Computed as  (A @ (x @ W.T)) / deg + b   when out_feats <= in_feats
    and as       ((A @ x) / deg) @ W.T + b   otherwise (identical for deg > 0).
    """
    n, in_feats = x.shape
    out_feats = weight.shape[0]

    a = _dense_adjacency(edge_index, n)

    # Tiling / padding: lane dims to multiples of 128, node dim to the tile sizes.
    tm = 256 if n >= 256 else 128
    tk = 512 if n >= 512 else tm          # tm divides tk by construction
    n_p = _round_up(n, tk)
    in_p = _round_up(in_feats, 128)
    out_p = _round_up(out_feats, 128)

    x_p = jnp.pad(x.astype(jnp.float32), ((0, n_p - n), (0, in_p - in_feats)))
    a_p = jnp.pad(a, ((0, n_p - n), (0, n_p - n)))
    wt_p = jnp.pad(weight.T.astype(jnp.float32),
                   ((0, in_p - in_feats), (0, out_p - out_feats)))
    b_p = jnp.pad(bias.astype(jnp.float32).reshape(1, -1),
                  ((0, 0), (0, out_p - out_feats)))

    tk_lin = _pick_k_tile(in_p)

    if out_feats <= in_feats:
        # project first, aggregate the (smaller) hidden features
        h_p = _linear(x_p, wt_p, jnp.zeros((1, out_p), jnp.float32), tm, tk_lin)
        out_pd = _aggregate(a_p, h_p, b_p, tm, tk)
    else:
        # aggregate raw features first, then project
        agg_p = _aggregate(a_p, x_p, jnp.zeros((1, in_p), jnp.float32), tm, tk)
        out_pd = _linear(agg_p, wt_p, b_p, tm, tk_lin)

    return out_pd[:n, :out_feats]


# ----------------------------------------------------------------------------
# Demo / self-check
# ----------------------------------------------------------------------------
def _reference(x, edge_index, weight, bias):
    n = x.shape[0]
    a = jnp.zeros((n, n), jnp.float32).at[edge_index[0], edge_index[1]].add(1.0)
    h = x @ weight.T + bias
    deg = a.sum(-1, keepdims=True)
    return jnp.where(deg > 0, (a @ h) / jnp.maximum(deg, 1.0), 0.0)


def _make_example(key, n, in_feats, out_feats, num_edges):
    k1, k2, k3, k4, k5 = jax.random.split(key, 5)
    x = jax.random.normal(k1, (n, in_feats), dtype=jnp.float32)
    src = jax.random.randint(k2, (num_edges,), 0, n)
    dst = jax.random.randint(k3, (num_edges,), 0, n)
    loops = jnp.arange(n)  # self-loops keep every row degree >= 1
    edge_index = jnp.stack([jnp.concatenate([src, loops]),
                            jnp.concatenate([dst, loops])])
    w = jax.random.normal(k4, (out_feats, in_feats), dtype=jnp.float32) * 0.1
    b = jax.random.normal(k5, (out_feats,), dtype=jnp.float32) * 0.1
    return x, edge_index, w, b


if __name__ == "__main__":
    key = jax.random.PRNGKey(0)
    k_a, k_b = jax.random.split(key)

    # Config 1: out_feats < in_feats  -> aggregate the projected features.
    x1, ei1, w1, b1 = _make_example(k_a, n=80, in_feats=64, out_feats=32,
                                    num_edges=400)
    out1 = jax.block_until_ready(graphsage_layer_forward(x1, ei1, w1, b1))
    ref1 = _reference(x1, ei1, w1, b1)
    assert out1.shape == ref1.shape
    assert bool(jnp.allclose(out1, ref1, rtol=5e-2, atol=5e-3))

    # Config 2: out_feats > in_feats  -> aggregate raw features, then project.
    x2, ei2, w2, b2 = _make_example(k_b, n=50, in_feats=16, out_feats=96,
                                    num_edges=150)
    out2 = jax.block_until_ready(graphsage_layer_forward(x2, ei2, w2, b2))
    ref2 = _reference(x2, ei2, w2, b2)
    assert out2.shape == ref2.shape
    assert bool(jnp.allclose(out2, ref2, rtol=5e-2, atol=5e-3))

    print("KERNEL_OK")
</pallas_src>

<mosaic_0001>
module attributes {stable_mosaic.version = 11 : i64} {
  func.func @_linear_kernel(%arg0: i32, %arg1: i32, %arg2: memref<128x128xf32, #tpu.memory_space<vmem>>, %arg3: memref<128x128xf32, #tpu.memory_space<vmem>>, %arg4: memref<1x128xf32, #tpu.memory_space<vmem>>, %arg5: memref<128x128xf32, #tpu.memory_space<vmem>>, %arg6: memref<128x128xf32, #tpu.memory_space<vmem>>) attributes {dimension_semantics = [#tpu.dimension_semantics<parallel>, #tpu.dimension_semantics<arbitrary>], iteration_bounds = array<i64: 1, 1>, scalar_prefetch = 0 : i64, scratch_operands = 1 : i64, tpu.core_type = #tpu.core_type<tc>, window_params = [{transform_indices = @transform_0, window_bounds = array<i64: 128, 128>}, {transform_indices = @transform_1, window_bounds = array<i64: 128, 128>}, {pipeline_mode = #tpu.pipeline_mode<synchronous>, transform_indices = @transform_2, window_bounds = array<i64: 1, 128>}, {transform_indices = @transform_3, window_bounds = array<i64: 128, 128>}]} {
    %c0_i32 = arith.constant 0 : i32
    %0 = arith.cmpi eq, %arg1, %c0_i32 : i32
    %1 = arith.extui %0 : i1 to i32
    %c0_i32_0 = arith.constant 0 : i32
    %2 = arith.cmpi ne, %1, %c0_i32_0 : i32
    scf.if %2 {
      %cst_10 = arith.constant 0.000000e+00 : f32
      %12 = vector.broadcast %cst_10 : f32 to vector<128x128xf32>
      %c0_11 = arith.constant 0 : index
      %c0_12 = arith.constant 0 : index
      %13 = vector.load %arg6[%c0_11, %c0_12] : memref<128x128xf32, #tpu.memory_space<vmem>>, vector<128x128xf32>
      tpu.vector_store %arg6[%c0_11, %c0_12], %12 {strides = array<i32>} : memref<128x128xf32, #tpu.memory_space<vmem>>, vector<128x128xf32>,
    } else {
    }
    %c0 = arith.constant 0 : index
    %c0_1 = arith.constant 0 : index
    %3 = vector.load %arg6[%c0, %c0_1] : memref<128x128xf32, #tpu.memory_space<vmem>>, vector<128x128xf32>
    %c0_2 = arith.constant 0 : index
    %c0_3 = arith.constant 0 : index
    %4 = vector.load %arg2[%c0_2, %c0_3] : memref<128x128xf32, #tpu.memory_space<vmem>>, vector<128x128xf32>
    %c0_4 = arith.constant 0 : index
    %c0_5 = arith.constant 0 : index
    %5 = vector.load %arg3[%c0_4, %c0_5] : memref<128x128xf32, #tpu.memory_space<vmem>>, vector<128x128xf32>
    %cst = arith.constant dense<0.000000e+00> : vector<128x128xf32>
    %6 = tpu.matmul %4, %5, %cst {dimension_numbers = #tpu.dot_dimension_numbers<[1], [0], [0], [1], [0, 0, 1, 1], [], []>} : vector<128x128xf32>, vector<128x128xf32>, vector<128x128xf32> -> vector<128x128xf32>
    %7 = arith.addf %3, %6 : vector<128x128xf32>
    %c0_6 = arith.constant 0 : index
    %c0_7 = arith.constant 0 : index
    %8 = vector.load %arg6[%c0_6, %c0_7] : memref<128x128xf32, #tpu.memory_space<vmem>>, vector<128x128xf32>
    tpu.vector_store %arg6[%c0_6, %c0_7], %7 {strides = array<i32>} : memref<128x128xf32, #tpu.memory_space<vmem>>, vector<128x128xf32>,
    %c0_i32_8 = arith.constant 0 : i32
    %9 = arith.cmpi eq, %arg1, %c0_i32_8 : i32
    %10 = arith.extui %9 : i1 to i32
    %c0_i32_9 = arith.constant 0 : i32
    %11 = arith.cmpi ne, %10, %c0_i32_9 : i32
    scf.if %11 {
      %c0_10 = arith.constant 0 : index
      %c0_11 = arith.constant 0 : index
      %12 = vector.load %arg6[%c0_10, %c0_11] : memref<128x128xf32, #tpu.memory_space<vmem>>, vector<128x128xf32>
      %c0_12 = arith.constant 0 : index
      %c0_13 = arith.constant 0 : index
      %13 = vector.load %arg4[%c0_12, %c0_13] : memref<1x128xf32, #tpu.memory_space<vmem>>, vector<1x128xf32>
      %14 = vector.broadcast %13 : vector<1x128xf32> to vector<128x128xf32>
      %15 = arith.addf %12, %14 : vector<128x128xf32>
      %c0_14 = arith.constant 0 : index
      %c0_15 = arith.constant 0 : index
      %16 = vector.load %arg5[%c0_14, %c0_15] : memref<128x128xf32, #tpu.memory_space<vmem>>, vector<128x128xf32>
      tpu.vector_store %arg5[%c0_14, %c0_15], %15 {strides = array<i32>} : memref<128x128xf32, #tpu.memory_space<vmem>>, vector<128x128xf32>,
    } else {
    }
    return
  }
  func.func @transform_0(%arg0: i32, %arg1: i32) -> (i32, i32) {
    %c0_i32 = arith.constant 0 : i32
    return %arg0, %arg1 : i32, i32
  }
  func.func @transform_1(%arg0: i32, %arg1: i32) -> (i32, i32) {
    %c0_i32 = arith.constant 0 : i32
    %c0_i32_0 = arith.constant 0 : i32
    return %arg1, %c0_i32 : i32, i32
  }
  func.func @transform_2(%arg0: i32, %arg1: i32) -> (i32, i32) {
    %c0_i32 = arith.constant 0 : i32
    %c0_i32_0 = arith.constant 0 : i32
    %c0_i32_1 = arith.constant 0 : i32
    return %c0_i32, %c0_i32_0 : i32, i32
  }
  func.func @transform_3(%arg0: i32, %arg1: i32) -> (i32, i32) {
    %c0_i32 = arith.constant 0 : i32
    %c0_i32_0 = arith.constant 0 : i32
    return %arg0, %c0_i32 : i32, i32
  }
}

</mosaic_0001>

<bundles_post_ra>
// kernel: tpu_custom_call.1
= control target key start
LH: loop header
LB: loop body
LE: loop exit
PB: predicated region body
PF: predicated region fallthrough
CT: control target
= control target key end

     0   :  { %8 = vsyncpa [#allocation4], 0  ;;  %s602_s0 = inlined_call_operand.hbm [shape: f32[128,128], index: 0, kind: input, shape index: {}]   ;;  %s603_s1 = inlined_call_operand.hbm [shape: f32[128,128], index: 1, kind: input, shape index: {}]   ;;  %s604_s2 = inlined_call_operand.vmem [shape: f32[1,128], index: 2, kind: input, shape index: {}]   ;;  %s605_s3 = inlined_call_operand.hbm [shape: f32[128,128], index: 3, kind: output, shape index: {}]  }
   0x1   :  { %9 = vsyncpa [#allocation7], 0 }
   0x2   :  { %10 = vsyncpa [#allocation5], 0  ;;  %s556_s12 = smov [#allocation3]  }
   0x3   :  { %s16_s13 = sshll.u32 %s556_s12, 4  ;;  %s17_s13 = int_to_ptr.vmem [resolvable:$true] %s16_s13 }
   0x4   :  { %s498_s14 = scalar_lea.vmem %s17_s13, 2048  ;;  %p503_p1 = scmp.lt.s32.totalorder %s17_s13, %s17_s13 }
   0x5   :  { %p499_p0 = scmp.ne.s32.totalorder %s17_s13, %s498_s14  ;;  %p504_p2 = scmp.lt.s32.totalorder %s498_s14, %s498_s14 }
   0x7   :  { %p505_p3 = por %p504_p2, %p503_p1 }
   0x9   :  { %p506_p4 = pnand %p505_p3, %p499_p0 }
   0xb   :  { %509 = shalt.err (!%p506_p4)
}
   0xc   :  { %s557_s15 = smov 128   ;;  %s558_s16 = smov 8  }
   0xd   :  { %22 = dma.hbm_to_vmem [thread:$0]  %s602_s0, 2048, %s17_s13, [#allocation4], %s557_s15, %s557_s15, %s558_s16  }
   0xe   :  { %s559_s19 = smov [#allocation6]  }
   0xf   :  { %s28_s20 = sshll.u32 %s559_s19, 4  ;;  %s29_s20 = int_to_ptr.vmem [resolvable:$true] %s28_s20 }
  0x10   :  { %s518_s21 = scalar_lea.vmem %s29_s20, 2048  ;;  %p523_p6 = scmp.lt.s32.totalorder %s29_s20, %s29_s20 }
  0x11   :  { %p519_p5 = scmp.ne.s32.totalorder %s29_s20, %s518_s21  ;;  %p524_p7 = scmp.lt.s32.totalorder %s518_s21, %s518_s21 }
  0x13   :  { %p525_p8 = por %p524_p7, %p523_p6 }
  0x15   :  { %p526_p9 = pnand %p525_p8, %p519_p5 }
  0x17   :  { %529 = shalt.err (!%p526_p9)
}
  0x18   :  { %34 = dma.hbm_to_vmem [thread:$0]  %s603_s1, 2048, %s29_s20, [#allocation7], %s557_s15, %s557_s15, %s558_s16  }
  0x19   :  { %550 = dma.done.wait [#allocation4], 2048  }
  0x1a   :  { %551 = vsyncadd [#allocation4], 4294965248 }
  0x1b   :  { %552 = dma.done.wait [#allocation7], 2048  }
  0x1c   :  { %553 = vsyncadd [#allocation7], 4294965248  ;;  %v110_v0 = vld [vmem:[#allocation6 + $0x78] sm:$0xff]  ;;  %v109_v1 = vld [vmem:[#allocation6 + $0x70] sm:$0xff] }
  0x1d   :  { %397 = vmatprep.subr.mxu0 %v110_v0  ;;  %453 = vmatprep.subr.mxu1 %v110_v0  ;;  %v108_v2 = vld [vmem:[#allocation6 + $0x68] sm:$0xff]  ;;  %v107_v3 = vld [vmem:[#allocation6 + $0x60] sm:$0xff]  ;;  %v106_v4 = vld [vmem:[#allocation6 + $0x58] sm:$0xff] }
  0x1e   :  { %398 = vmatpush3.msra.mxu0 %v110_v0  ;;  %469 = vmatpush3.msra.mxu1 %v110_v0  ;;  %v105_v5 = vld [vmem:[#allocation6 + $0x50] sm:$0xff]  ;;  %v104_v6 = vld [vmem:[#allocation6 + $0x48] sm:$0xff]  ;;  %v103_v7 = vld [vmem:[#allocation6 + $0x40] sm:$0xff] }
  0x1f   :  { %399 = vmatprep.subr.mxu0 %v109_v1  ;;  %454 = vmatprep.subr.mxu1 %v109_v1  ;;  %v102_v8 = vld [vmem:[#allocation6 + $0x38] sm:$0xff]  ;;  %v101_v9 = vld [vmem:[#allocation6 + $0x30] sm:$0xff]  ;;  %v100_v10 = vld [vmem:[#allocation6 + $0x28] sm:$0xff] }
  0x20   :  { %400 = vmatpush3.msra.mxu0 %v109_v1  ;;  %470 = vmatpush3.msra.mxu1 %v109_v1  ;;  %v99_v11 = vld [vmem:[#allocation6 + $0x20] sm:$0xff]  ;;  %v98_v12 = vld [vmem:[#allocation6 + $0x18] sm:$0xff]  ;;  %v97_v13 = vld [vmem:[#allocation6 + $0x10] sm:$0xff] }
  0x21   :  { %401 = vmatprep.subr.mxu0 %v108_v2  ;;  %455 = vmatprep.subr.mxu1 %v108_v2  ;;  %v96_v14 = vld [vmem:[#allocation6 + $0x8] sm:$0xff]  ;;  %v95_v15 = vld [vmem:[#allocation6] sm:$0xff]  ;;  %v81_v20 = vld [vmem:[#allocation3 + $0x10] sm:$0xff] }
  0x22   :  { %402 = vmatpush3.msra.mxu0 %v108_v2  ;;  %471 = vmatpush3.msra.mxu1 %v108_v2  ;;  %v79_v16 = vld [vmem:[#allocation3] sm:$0xff]  ;;  %v80_v18 = vld [vmem:[#allocation3 + $0x8] sm:$0xff]  ;;  %v89_v21 = vld [vmem:[#allocation3 + $0x50] sm:$0xff] }
  0x23   :  { %403 = vmatprep.subr.mxu0 %v107_v3  ;;  %456 = vmatprep.subr.mxu1 %v107_v3  ;;  %v87_v17 = vld [vmem:[#allocation3 + $0x40] sm:$0xff]  ;;  %v88_v19 = vld [vmem:[#allocation3 + $0x48] sm:$0xff]  ;;  %v82_v22 = vld [vmem:[#allocation3 + $0x18] sm:$0xff] }
  0x24   :  { %404 = vmatpush3.msra.mxu0 %v107_v3  ;;  %472 = vmatpush3.msra.mxu1 %v107_v3  ;;  %v90_v23 = vld [vmem:[#allocation3 + $0x58] sm:$0xff]  ;;  %v83_v24 = vld [vmem:[#allocation3 + $0x20] sm:$0xff]  ;;  %v84_v26 = vld [vmem:[#allocation3 + $0x28] sm:$0xff] }
  0x25   :  { %405 = vmatprep.subr.mxu0 %v106_v4  ;;  %457 = vmatprep.subr.mxu1 %v106_v4  ;;  %v91_v25 = vld [vmem:[#allocation3 + $0x60] sm:$0xff]  ;;  %v92_v27 = vld [vmem:[#allocation3 + $0x68] sm:$0xff]  ;;  %v85_v28 = vld [vmem:[#allocation3 + $0x30] sm:$0xff] }
  0x26   :  { %406 = vmatpush3.msra.mxu0 %v106_v4  ;;  %473 = vmatpush3.msra.mxu1 %v106_v4  ;;  %v93_v29 = vld [vmem:[#allocation3 + $0x70] sm:$0xff]  ;;  %v86_v30 = vld [vmem:[#allocation3 + $0x38] sm:$0xff]  ;;  %v364_v32 = vld [vmem:[%s604_s2] ss:$0 sm:$0xff]  ;;  %s560_s2 = smov [#allocation8]  }
  0x27   :  { %407 = vmatprep.subr.mxu0 %v105_v5  ;;  %458 = vmatprep.subr.mxu1 %v105_v5  ;;  %v94_v31 = vld [vmem:[#allocation3 + $0x78] sm:$0xff]  ;;  %s351_s24 = sshll.u32 %s560_s2, 4  ;;  %s352_s24 = int_to_ptr.vmem [resolvable:$true] %s351_s24 }
  0x28   :  { %408 = vmatpush3.msra.mxu0 %v105_v5  ;;  %474 = vmatpush3.msra.mxu1 %v105_v5  ;;  %s530_s25 = scalar_lea.vmem %s352_s24, 2048  ;;  %p535_p11 = scmp.lt.s32.totalorder %s352_s24, %s352_s24 }
  0x29   :  { %409 = vmatprep.subr.mxu0 %v104_v6  ;;  %459 = vmatprep.subr.mxu1 %v104_v6  ;;  %p531_p10 = scmp.ne.s32.totalorder %s352_s24, %s530_s25  ;;  %p536_p12 = scmp.lt.s32.totalorder %s530_s25, %s530_s25 }
  0x2a   :  { %410 = vmatpush3.msra.mxu0 %v104_v6  ;;  %475 = vmatpush3.msra.mxu1 %v104_v6 }
  0x2b   :  { %411 = vmatprep.subr.mxu0 %v103_v7  ;;  %460 = vmatprep.subr.mxu1 %v103_v7  ;;  %p537_p13 = por %p536_p12, %p535_p11 }
  0x2c   :  { %412 = vmatpush3.msra.mxu0 %v103_v7  ;;  %476 = vmatpush3.msra.mxu1 %v103_v7 }
  0x2d   :  { %413 = vmatprep.subr.mxu0 %v102_v8  ;;  %461 = vmatprep.subr.mxu1 %v102_v8  ;;  %p538_p0 = pnand %p537_p13, %p531_p10 }
  0x2e   :  { %414 = vmatpush3.msra.mxu0 %v102_v8  ;;  %477 = vmatpush3.msra.mxu1 %v102_v8 }
  0x2f   :  { %415 = vmatprep.subr.mxu0 %v101_v9  ;;  %462 = vmatprep.subr.mxu1 %v101_v9 }
  0x30   :  { %416 = vmatpush3.msra.mxu0 %v101_v9  ;;  %478 = vmatpush3.msra.mxu1 %v101_v9 }
  0x31   :  { %417 = vmatprep.subr.mxu0 %v100_v10  ;;  %463 = vmatprep.subr.mxu1 %v100_v10 }
  0x32   :  { %418 = vmatpush3.msra.mxu0 %v100_v10  ;;  %479 = vmatpush3.msra.mxu1 %v100_v10 }
  0x33   :  { %419 = vmatprep.subr.mxu0 %v99_v11  ;;  %464 = vmatprep.subr.mxu1 %v99_v11 }
  0x34   :  { %420 = vmatpush3.msra.mxu0 %v99_v11  ;;  %480 = vmatpush3.msra.mxu1 %v99_v11 }
  0x35   :  { %421 = vmatprep.subr.mxu0 %v98_v12  ;;  %465 = vmatprep.subr.mxu1 %v98_v12 }
  0x36   :  { %422 = vmatpush3.msra.mxu0 %v98_v12  ;;  %481 = vmatpush3.msra.mxu1 %v98_v12 }
  0x37   :  { %423 = vmatprep.subr.mxu0 %v97_v13  ;;  %466 = vmatprep.subr.mxu1 %v97_v13 }
  0x38   :  { %424 = vmatpush3.msra.mxu0 %v97_v13  ;;  %482 = vmatpush3.msra.mxu1 %v97_v13 }
  0x39   :  { %425 = vmatprep.subr.mxu0 %v96_v14  ;;  %467 = vmatprep.subr.mxu1 %v96_v14 }
  0x3a   :  { %426 = vmatpush3.msra.mxu0 %v96_v14  ;;  %483 = vmatpush3.msra.mxu1 %v96_v14 }
  0x3b   :  { %427 = vmatprep.subr.mxu0 %v95_v15  ;;  %468 = vmatprep.subr.mxu1 %v95_v15 }
  0x3c   :  { %428 = vmatpush3.msra.mxu0 %v95_v15  ;;  %484 = vmatpush3.msra.mxu1 %v95_v15 }
  0x3d   :  { %429 = vmatprep.mubr.f32.mxu0 %v79_v16  ;;  %441 = vmatprep.mubr.f32.mxu1 %v87_v17 }
  0x3e   :  { %430 = vmatmul.mubr.f32.vlgmr.msra.gmra.mxu0 %v80_v18  ;;  %442 = vmatmul.mubr.f32.vlgmr.msra.gmra.mxu1 %v88_v19 }
  0x3f   :  { %432 = vmatprep.mubr.f32.mxu0 %v81_v20  ;;  %444 = vmatprep.mubr.f32.mxu1 %v89_v21 }
  0x42   :  { %433 = vmatmul.mubr.f32.gmra.mxu0 %v82_v22  ;;  %445 = vmatmul.mubr.f32.gmra.mxu1 %v90_v23 }
  0x43   :  { %435 = vmatprep.mubr.f32.mxu0 %v83_v24  ;;  %447 = vmatprep.mubr.f32.mxu1 %v91_v25 }
  0x46   :  { %436 = vmatmul.mubr.f32.gmra.mxu0 %v84_v26  ;;  %448 = vmatmul.mubr.f32.gmra.mxu1 %v92_v27 }
  0x47   :  { %438 = vmatprep.mubr.f32.mxu0 %v85_v28  ;;  %450 = vmatprep.mubr.f32.mxu1 %v93_v29 }
  0x4a   :  { %439 = vmatmul.mubr.f32.gmra.mxu0 %v86_v30  ;;  %451 = vmatmul.mubr.f32.gmra.mxu1 %v94_v31 }
  0xfe   :  { %v431_v33 = vpop.f32.mrf.mxu0  ;;  %v443_v34 = vpop.f32.mrf.mxu1 }
  0xff   :  { %v315_v35 = vadd.f32 %v431_v33, %v364_v32  ;;  %v323_v36 = vadd.f32 %v443_v34, %v364_v32 }
 0x100   :  { %v177_v37 = vpop.f32.mrf.mxu0  ;;  %v217_v38 = vpop.f32.mrf.mxu1 }
 0x101   :  { %331 = vst [vmem:[#allocation8 + $0x8] sm:$0xff] %v315_v35  ;;  %339 = vst [vmem:[#allocation8 + $0x48] sm:$0xff] %v323_v36  ;;  %v314_v39 = vadd.f32 %v364_v32, %v177_v37  ;;  %v322_v40 = vadd.f32 %v364_v32, %v217_v38 }
 0x102   :  { %v434_v41 = vpop.f32.mrf.mxu0  ;;  %v446_v42 = vpop.f32.mrf.mxu1 }
 0x103   :  { %330 = vst [vmem:[#allocation8] sm:$0xff] %v314_v39  ;;  %338 = vst [vmem:[#allocation8 + $0x40] sm:$0xff] %v322_v40  ;;  %v317_v43 = vadd.f32 %v434_v41, %v364_v32  ;;  %v325_v44 = vadd.f32 %v446_v42, %v364_v32 }
 0x104   :  { %v187_v45 = vpop.f32.mrf.mxu0  ;;  %v227_v46 = vpop.f32.mrf.mxu1 }
 0x105   :  { %333 = vst [vmem:[#allocation8 + $0x18] sm:$0xff] %v317_v43  ;;  %341 = vst [vmem:[#allocation8 + $0x58] sm:$0xff] %v325_v44  ;;  %v316_v47 = vadd.f32 %v364_v32, %v187_v45  ;;  %v324_v48 = vadd.f32 %v364_v32, %v227_v46 }
 0x106   :  { %v437_v49 = vpop.f32.mrf.mxu0  ;;  %v449_v50 = vpop.f32.mrf.mxu1 }
 0x107   :  { %332 = vst [vmem:[#allocation8 + $0x10] sm:$0xff] %v316_v47  ;;  %340 = vst [vmem:[#allocation8 + $0x50] sm:$0xff] %v324_v48  ;;  %v319_v51 = vadd.f32 %v437_v49, %v364_v32  ;;  %v327_v52 = vadd.f32 %v449_v50, %v364_v32 }
 0x108   :  { %v197_v53 = vpop.f32.mrf.mxu0  ;;  %v237_v54 = vpop.f32.mrf.mxu1 }
 0x109   :  { %335 = vst [vmem:[#allocation8 + $0x28] sm:$0xff] %v319_v51  ;;  %343 = vst [vmem:[#allocation8 + $0x68] sm:$0xff] %v327_v52  ;;  %v318_v55 = vadd.f32 %v364_v32, %v197_v53  ;;  %v326_v56 = vadd.f32 %v364_v32, %v237_v54 }
 0x10a   :  { %v440_v57 = vpop.f32.mrf.mxu0  ;;  %v452_v58 = vpop.f32.mrf.mxu1 }
 0x10b   :  { %334 = vst [vmem:[#allocation8 + $0x20] sm:$0xff] %v318_v55  ;;  %342 = vst [vmem:[#allocation8 + $0x60] sm:$0xff] %v326_v56  ;;  %v321_v59 = vadd.f32 %v440_v57, %v364_v32  ;;  %v329_v60 = vadd.f32 %v452_v58, %v364_v32 }
 0x10c   :  { %v207_v61 = vpop.f32.mrf.mxu0  ;;  %v247_v62 = vpop.f32.mrf.mxu1 }
 0x10d   :  { %337 = vst [vmem:[#allocation8 + $0x38] sm:$0xff] %v321_v59  ;;  %345 = vst [vmem:[#allocation8 + $0x78] sm:$0xff] %v329_v60  ;;  %v320_v63 = vadd.f32 %v364_v32, %v207_v61  ;;  %v328_v0 = vadd.f32 %v364_v32, %v247_v62 }
 0x10f   :  { %336 = vst [vmem:[#allocation8 + $0x30] sm:$0xff] %v320_v63  ;;  %344 = vst [vmem:[#allocation8 + $0x70] sm:$0xff] %v328_v0 }
 0x110   :  { %541 = shalt.err (!%p538_p0)
}
 0x111   :  { %357 = dma.vmem_to_hbm [thread:$0]  %s352_s24, 2048, %s605_s3, [#allocation5], %s557_s15, %s557_s15, %s558_s16  }
 0x112   :  { %554 = dma.done.wait [#allocation5], 2048  }
 0x113   :  { %555 = vsyncadd [#allocation5], 4294965248 }
 0x114   :  { %361 = vsyncpa [#allocation4], 1 }
 0x115   :  { %362 = vsyncpa [#allocation7], 1 }
 0x116   :  { %363 = vsyncpa [#allocation5], 1 }

</bundles_post_ra>
